<compile_context>
chip_gen: v7x
topology: tpu7x:2x2x1
jax: 0.10.0
libtpu: 0.0.40
codegen_flags: <defaults>
</compile_context>

<pallas_src>
import numpy as np
import jax
import jax.numpy as jnp
from jax.experimental import pallas as pl
from jax.experimental.pallas import tpu as pltpu

# ---------------- small (but structurally faithful) hyper-parameters --------
AUDIO_FEATURES = 12      # default 29
AUDIO_WINDOW = 8         # default 16 (must collapse to 1 after 4 stride-2 convs)
BASE_PERSONS = 4         # default 8
ENCODER_FEATURES = 16    # default 50
VERTICES = 8             # default 5023
CHANNELS = (32, 32, 64, 64)
FC1 = 128
EPS = 1e-5


def conv_out_len(h):     # kernel 3, stride 2, padding 1 along H
    return (h + 2 - 3) // 2 + 1


C0 = AUDIO_FEATURES + BASE_PERSONS
H0 = AUDIO_WINDOW
H1 = conv_out_len(H0)
H2 = conv_out_len(H1)
H3 = conv_out_len(H2)
H4 = conv_out_len(H3)
assert H4 == 1, "audio_window_size must reduce to 1 after the 4 stride-2 convs"
FLAT = CHANNELS[-1] * H4                 # flattened conv features (== 64)
OUT_DIM = 3 * VERTICES

LANE = 128
OUT_PAD = ((OUT_DIM + LANE - 1) // LANE) * LANE   # lane-dense output width
BLOCK_B_MAX = 128        # per-step batch block cap (sized against v7x 64 MiB VMEM
                         # with the real OUT_DIM=15069 double-buffered f32 output)


def _round_up(a, m):
    return (a + m - 1) // m * m


# ------------------------------- kernel -------------------------------------
def _voca_kernel(x_ref, pid_ref,
                 wa1_ref, wp1_ref, b1_ref,
                 w2_ref, b2_ref,
                 w3_ref, b3_ref,
                 w4_ref, b4_ref,
                 fc1wf_ref, fc1wp_ref, fc1b_ref,
                 fc2w_ref, fc2b_ref,
                 decw_ref, decb_ref,
                 out_ref):
    x = x_ref[...]                                    # (B, H0*AF)  f32
    pid = pid_ref[...]                                # (B, BP)     f32 one-hot

    # conv1 (+ BN + pid-concat, all folded into the weights/bias) + ReLU
    h = jnp.dot(x, wa1_ref[...], preferred_element_type=jnp.float32)
    h = h + jnp.dot(pid, wp1_ref[...], preferred_element_type=jnp.float32)
    h = jnp.maximum(h + b1_ref[...], 0.0)             # (B, H1*C1)

    # conv2..conv4 as single dense time-mixing matmuls + bias + ReLU
    h = jnp.maximum(
        jnp.dot(h, w2_ref[...], preferred_element_type=jnp.float32) + b2_ref[...], 0.0)
    h = jnp.maximum(
        jnp.dot(h, w3_ref[...], preferred_element_type=jnp.float32) + b3_ref[...], 0.0)
    h = jnp.maximum(
        jnp.dot(h, w4_ref[...], preferred_element_type=jnp.float32) + b4_ref[...], 0.0)
    # h: (B, FLAT)  — H4 == 1 so this matches PyTorch's channel-major flatten

    # fc1 over concat(features, pid) == split matmul, then tanh
    h = jnp.tanh(
        jnp.dot(h, fc1wf_ref[...], preferred_element_type=jnp.float32)
        + jnp.dot(pid, fc1wp_ref[...], preferred_element_type=jnp.float32)
        + fc1b_ref[...])
    # fc2 (encoder output)
    e = jnp.dot(h, fc2w_ref[...], preferred_element_type=jnp.float32) + fc2b_ref[...]
    # decoder (lane-padded output)
    out_ref[...] = (jnp.dot(e, decw_ref[...], preferred_element_type=jnp.float32)
                    + decb_ref[...]).astype(out_ref.dtype)


# ----------------------- parameter preprocessing (exact) ---------------------
def _prepare_weights(params):
    """Fold eval-mode BN, the conv (k=3,s=2,p=1) time structure and the person
    one-hot concat into dense matmul weights.  Exact, done once per parameter set."""
    gamma, beta, rmean, rvar = (np.asarray(a, np.float64) for a in params["bn"])
    bn_scale = float(gamma[0] / np.sqrt(rvar[0] + EPS))
    bn_shift = float(beta[0] - rmean[0] * bn_scale)

    heights = (H0, H1, H2, H3, H4)
    afe = AUDIO_FEATURES

    # conv1: audio part (BN scale folded), pid part, effective bias (BN shift folded,
    # boundary rows see only the taps that hit real (non-padded) input rows)
    w1, b1 = params["conv1"]
    w1 = np.asarray(w1, np.float32)                   # (3, C0, C1)
    b1 = np.asarray(b1, np.float32).reshape(-1)       # (C1,)
    c1 = w1.shape[2]
    wa1 = np.zeros((H0 * afe, H1 * c1), np.float32)
    wp1 = np.zeros((BASE_PERSONS, H1 * c1), np.float32)
    b1e = np.tile(b1, H1).astype(np.float32)
    for o in range(H1):
        for k in range(3):
            t = 2 * o + k - 1
            if 0 <= t < H0:
                wa1[t * afe:(t + 1) * afe, o * c1:(o + 1) * c1] += bn_scale * w1[k, :afe, :]
                wp1[:, o * c1:(o + 1) * c1] += w1[k, afe:, :]
                b1e[o * c1:(o + 1) * c1] += bn_shift * w1[k, :afe, :].sum(axis=0)

    # conv2..conv4: dense time-mixing matrices + tiled biases
    mats = []
    for i in (2, 3, 4):
        w, b = params[f"conv{i}"]
        w = np.asarray(w, np.float32)                 # (3, Cin, Cout)
        b = np.asarray(b, np.float32).reshape(-1)
        cin, cout = w.shape[1], w.shape[2]
        h_in, h_out = heights[i - 1], heights[i]
        W = np.zeros((h_in * cin, h_out * cout), np.float32)
        for o in range(h_out):
            for k in range(3):
                t = 2 * o + k - 1
                if 0 <= t < h_in:
                    W[t * cin:(t + 1) * cin, o * cout:(o + 1) * cout] += w[k]
        mats.append((W, np.tile(b, h_out).reshape(1, -1)))

    fc1w, fc1b = params["fc1"]
    fc2w, fc2b = params["fc2"]
    decw, decb = params["dec"]
    fc1w = np.asarray(fc1w, np.float32)

    # pad decoder out-dim to a lane multiple so the final store is unmasked
    decw_p = np.zeros((ENCODER_FEATURES, OUT_PAD), np.float32)
    decw_p[:, :OUT_DIM] = np.asarray(decw, np.float32)
    decb_p = np.zeros((1, OUT_PAD), np.float32)
    decb_p[:, :OUT_DIM] = np.asarray(decb, np.float32).reshape(1, -1)

    (w2m, b2e), (w3m, b3e), (w4m, b4e) = mats
    j = jnp.asarray
    return (j(wa1), j(wp1), j(b1e.reshape(1, -1)),
            j(w2m), j(b2e), j(w3m), j(b3e), j(w4m), j(b4e),
            j(fc1w[:FLAT]), j(fc1w[FLAT:]),
            j(np.asarray(fc1b, np.float32).reshape(1, -1)),
            j(np.asarray(fc2w, np.float32)),
            j(np.asarray(fc2b, np.float32).reshape(1, -1)),
            j(decw_p), j(decb_p))


# ------------------------------- wrapper -------------------------------------
def voca_pallas(params, x, pid_idx):
    n = x.shape[0]
    weights = _prepare_weights(params)

    # batch block: multiple of 8 sublanes, capped for VMEM (v7x-safe)
    block_b = min(BLOCK_B_MAX, _round_up(max(n, 1), 8))
    n_pad = _round_up(n, block_b)

    # per-sample activations as 2-D (batch, time*feature) rows; pad batch with zeros
    x2 = x.astype(jnp.float32).reshape(n, H0 * AUDIO_FEATURES)
    pid_oh = jax.nn.one_hot(pid_idx, BASE_PERSONS, dtype=jnp.float32)   # F.one_hot
    if n_pad != n:
        x2 = jnp.pad(x2, ((0, n_pad - n), (0, 0)))
        pid_oh = jnp.pad(pid_oh, ((0, n_pad - n), (0, 0)))

    def full(a):   # whole (small) weight resident in VMEM, same block every step
        nd = a.ndim
        return pl.BlockSpec(a.shape, lambda i, _nd=nd: (0,) * _nd)

    in_specs = [
        pl.BlockSpec((block_b, H0 * AUDIO_FEATURES), lambda i: (i, 0)),   # x block
        pl.BlockSpec((block_b, BASE_PERSONS), lambda i: (i, 0)),          # pid block
    ] + [full(a) for a in weights]

    out = pl.pallas_call(
        _voca_kernel,
        out_shape=jax.ShapeDtypeStruct((n_pad, OUT_PAD), jnp.float32),
        grid_spec=pltpu.PrefetchScalarGridSpec(
            num_scalar_prefetch=0,
            grid=(n_pad // block_b,),
            in_specs=in_specs,
            out_specs=pl.BlockSpec((block_b, OUT_PAD), lambda i: (i, 0)),
        ),
        compiler_params=pltpu.CompilerParams(
            dimension_semantics=("parallel",),        # batch axis -> both TCs on v7x
            vmem_limit_bytes=64 * 1024 * 1024),
    )(x2, pid_oh, *weights)

    # slice off batch/lane padding; PyTorch: x.view(N, 1, -1, 3)
    return out[:n, :OUT_DIM].reshape(n, 1, VERTICES, 3)


# ------------------------- deterministic parameters --------------------------
def init_params(key):
    ks = jax.random.split(key, 16)

    def uni(k, shape, fan_in):
        b = 1.0 / np.sqrt(fan_in)
        return jax.random.uniform(k, shape, jnp.float32, -b, b)

    params = {}
    # BatchNorm2d(1): (gamma, beta, running_mean, running_var) — deterministic, non-trivial
    params["bn"] = (jnp.array([1.2], jnp.float32), jnp.array([0.05], jnp.float32),
                    jnp.array([0.1], jnp.float32), jnp.array([0.9], jnp.float32))
    cin = C0
    for i, cout in enumerate(CHANNELS):
        # conv weight stored as (k=3, Cin, Cout) == PyTorch (Cout, Cin, 3, 1) transposed
        w = uni(ks[i], (3, cin, cout), cin * 3)
        b = jnp.zeros((1, cout), jnp.float32)      # nn.init.constant_(bias, 0)
        params[f"conv{i + 1}"] = (w, b)
        cin = cout
    params["fc1"] = (uni(ks[8], (FLAT + BASE_PERSONS, FC1), FLAT + BASE_PERSONS),
                     uni(ks[9], (1, FC1), FLAT + BASE_PERSONS))
    params["fc2"] = (uni(ks[10], (FC1, ENCODER_FEATURES), FC1),
                     uni(ks[11], (1, ENCODER_FEATURES), FC1))
    params["dec"] = (uni(ks[12], (ENCODER_FEATURES, OUT_DIM), ENCODER_FEATURES),
                     uni(ks[13], (1, OUT_DIM), ENCODER_FEATURES))
    return params


# ------------------------- pure-JAX reference (NCHW) -------------------------
def voca_reference(params, x, pid_idx):
    n = x.shape[0]
    pid = jax.nn.one_hot(pid_idx, BASE_PERSONS, dtype=jnp.float32)
    gamma, beta, rmean, rvar = params["bn"]
    xb = (x - rmean[0]) / jnp.sqrt(rvar[0] + EPS) * gamma[0] + beta[0]
    xt = jnp.transpose(xb, (0, 3, 2, 1))                                   # (N, AF, H, 1)
    y = jnp.broadcast_to(pid[:, :, None, None], (n, BASE_PERSONS, H0, 1))
    z = jnp.concatenate([xt, y], axis=1)
    for i in range(4):
        w, b = params[f"conv{i + 1}"]
        w_oihw = jnp.transpose(w, (2, 1, 0))[:, :, :, None]                # (Cout, Cin, 3, 1)
        z = jax.lax.conv_general_dilated(z, w_oihw, window_strides=(2, 1),
                                         padding=((1, 1), (0, 0)),
                                         dimension_numbers=("NCHW", "OIHW", "NCHW"))
        z = jnp.maximum(z + b.reshape(1, -1, 1, 1), 0.0)
    feat = z.reshape(n, -1)
    fc1w, fc1b = params["fc1"]
    fc2w, fc2b = params["fc2"]
    decw, decb = params["dec"]
    h = jnp.tanh(jnp.concatenate([feat, pid], axis=1) @ fc1w + fc1b)
    e = h @ fc2w + fc2b
    o = e @ decw + decb
    return o.reshape(n, 1, VERTICES, 3)


if __name__ == "__main__":
    key = jax.random.PRNGKey(0)
    kp, kx, kpid = jax.random.split(key, 3)
    params = init_params(kp)

    x = jax.random.normal(kx, (2, 1, AUDIO_WINDOW, AUDIO_FEATURES), jnp.float32)
    pid_idx = jax.random.randint(kpid, (2,), 0, BASE_PERSONS)

    out = jax.block_until_ready(voca_pallas(params, x, pid_idx))
    ref = jax.block_until_ready(voca_reference(params, x, pid_idx))

    assert out.shape == (2, 1, VERTICES, 3)
    np.testing.assert_allclose(np.asarray(out), np.asarray(ref), rtol=1e-4, atol=1e-4)
    print("KERNEL_OK")
</pallas_src>

<mosaic_0001>
module attributes {stable_mosaic.version = 11 : i64} {
  func.func @_voca_kernel(%arg0: i32, %arg1: memref<8x96xf32, #tpu.memory_space<vmem>>, %arg2: memref<8x4xf32, #tpu.memory_space<vmem>>, %arg3: memref<96x128xf32, #tpu.memory_space<vmem>>, %arg4: memref<4x128xf32, #tpu.memory_space<vmem>>, %arg5: memref<1x128xf32, #tpu.memory_space<vmem>>, %arg6: memref<128x64xf32, #tpu.memory_space<vmem>>, %arg7: memref<1x64xf32, #tpu.memory_space<vmem>>, %arg8: memref<64x64xf32, #tpu.memory_space<vmem>>, %arg9: memref<1x64xf32, #tpu.memory_space<vmem>>, %arg10: memref<64x64xf32, #tpu.memory_space<vmem>>, %arg11: memref<1x64xf32, #tpu.memory_space<vmem>>, %arg12: memref<64x128xf32, #tpu.memory_space<vmem>>, %arg13: memref<4x128xf32, #tpu.memory_space<vmem>>, %arg14: memref<1x128xf32, #tpu.memory_space<vmem>>, %arg15: memref<128x16xf32, #tpu.memory_space<vmem>>, %arg16: memref<1x16xf32, #tpu.memory_space<vmem>>, %arg17: memref<16x128xf32, #tpu.memory_space<vmem>>, %arg18: memref<1x128xf32, #tpu.memory_space<vmem>>, %arg19: memref<8x128xf32, #tpu.memory_space<vmem>>) attributes {dimension_semantics = [#tpu.dimension_semantics<parallel>], iteration_bounds = array<i64: 1>, scalar_prefetch = 0 : i64, scratch_operands = 0 : i64, tpu.core_type = #tpu.core_type<tc>, window_params = [{transform_indices = @transform_0, window_bounds = array<i64: 8, 96>}, {transform_indices = @transform_1, window_bounds = array<i64: 8, 4>}, {pipeline_mode = #tpu.pipeline_mode<synchronous>, transform_indices = @transform_2, window_bounds = array<i64: 96, 128>}, {pipeline_mode = #tpu.pipeline_mode<synchronous>, transform_indices = @transform_3, window_bounds = array<i64: 4, 128>}, {pipeline_mode = #tpu.pipeline_mode<synchronous>, transform_indices = @transform_4, window_bounds = array<i64: 1, 128>}, {pipeline_mode = #tpu.pipeline_mode<synchronous>, transform_indices = @transform_5, window_bounds = array<i64: 128, 64>}, {pipeline_mode = #tpu.pipeline_mode<synchronous>, transform_indices = @transform_6, window_bounds = array<i64: 1, 64>}, {pipeline_mode = #tpu.pipeline_mode<synchronous>, transform_indices = @transform_7, window_bounds = array<i64: 64, 64>}, {pipeline_mode = #tpu.pipeline_mode<synchronous>, transform_indices = @transform_8, window_bounds = array<i64: 1, 64>}, {pipeline_mode = #tpu.pipeline_mode<synchronous>, transform_indices = @transform_9, window_bounds = array<i64: 64, 64>}, {pipeline_mode = #tpu.pipeline_mode<synchronous>, transform_indices = @transform_10, window_bounds = array<i64: 1, 64>}, {pipeline_mode = #tpu.pipeline_mode<synchronous>, transform_indices = @transform_11, window_bounds = array<i64: 64, 128>}, {pipeline_mode = #tpu.pipeline_mode<synchronous>, transform_indices = @transform_12, window_bounds = array<i64: 4, 128>}, {pipeline_mode = #tpu.pipeline_mode<synchronous>, transform_indices = @transform_13, window_bounds = array<i64: 1, 128>}, {pipeline_mode = #tpu.pipeline_mode<synchronous>, transform_indices = @transform_14, window_bounds = array<i64: 128, 16>}, {pipeline_mode = #tpu.pipeline_mode<synchronous>, transform_indices = @transform_15, window_bounds = array<i64: 1, 16>}, {pipeline_mode = #tpu.pipeline_mode<synchronous>, transform_indices = @transform_16, window_bounds = array<i64: 16, 128>}, {pipeline_mode = #tpu.pipeline_mode<synchronous>, transform_indices = @transform_17, window_bounds = array<i64: 1, 128>}, {transform_indices = @transform_18, window_bounds = array<i64: 8, 128>}]} {
    %c0 = arith.constant 0 : index
    %c0_0 = arith.constant 0 : index
    %0 = vector.load %arg1[%c0, %c0_0] : memref<8x96xf32, #tpu.memory_space<vmem>>, vector<8x96xf32>
    %c0_1 = arith.constant 0 : index
    %c0_2 = arith.constant 0 : index
    %1 = vector.load %arg2[%c0_1, %c0_2] : memref<8x4xf32, #tpu.memory_space<vmem>>, vector<8x4xf32>
    %c0_3 = arith.constant 0 : index
    %c0_4 = arith.constant 0 : index
    %2 = vector.load %arg3[%c0_3, %c0_4] : memref<96x128xf32, #tpu.memory_space<vmem>>, vector<96x128xf32>
    %cst = arith.constant dense<0.000000e+00> : vector<8x128xf32>
    %3 = tpu.matmul %0, %2, %cst {dimension_numbers = #tpu.dot_dimension_numbers<[1], [0], [0], [1], [0, 0, 1, 1], [], []>} : vector<8x96xf32>, vector<96x128xf32>, vector<8x128xf32> -> vector<8x128xf32>
    %c0_5 = arith.constant 0 : index
    %c0_6 = arith.constant 0 : index
    %4 = vector.load %arg4[%c0_5, %c0_6] : memref<4x128xf32, #tpu.memory_space<vmem>>, vector<4x128xf32>
    %cst_7 = arith.constant dense<0.000000e+00> : vector<8x128xf32>
    %5 = tpu.matmul %1, %4, %cst_7 {dimension_numbers = #tpu.dot_dimension_numbers<[1], [0], [0], [1], [0, 0, 1, 1], [], []>} : vector<8x4xf32>, vector<4x128xf32>, vector<8x128xf32> -> vector<8x128xf32>
    %6 = arith.addf %3, %5 : vector<8x128xf32>
    %c0_8 = arith.constant 0 : index
    %c0_9 = arith.constant 0 : index
    %7 = vector.load %arg5[%c0_8, %c0_9] : memref<1x128xf32, #tpu.memory_space<vmem>>, vector<1x128xf32>
    %8 = vector.broadcast %7 : vector<1x128xf32> to vector<8x128xf32>
    %9 = arith.addf %6, %8 : vector<8x128xf32>
    %cst_10 = arith.constant 0.000000e+00 : f32
    %10 = vector.broadcast %cst_10 : f32 to vector<8x128xf32>
    %11 = arith.maximumf %9, %10 : vector<8x128xf32>
    %c0_11 = arith.constant 0 : index
    %c0_12 = arith.constant 0 : index
    %12 = vector.load %arg6[%c0_11, %c0_12] : memref<128x64xf32, #tpu.memory_space<vmem>>, vector<128x64xf32>
    %cst_13 = arith.constant dense<0.000000e+00> : vector<8x64xf32>
    %13 = tpu.matmul %11, %12, %cst_13 {dimension_numbers = #tpu.dot_dimension_numbers<[1], [0], [0], [1], [0, 0, 1, 1], [], []>} : vector<8x128xf32>, vector<128x64xf32>, vector<8x64xf32> -> vector<8x64xf32>
    %c0_14 = arith.constant 0 : index
    %c0_15 = arith.constant 0 : index
    %14 = vector.load %arg7[%c0_14, %c0_15] : memref<1x64xf32, #tpu.memory_space<vmem>>, vector<1x64xf32>
    %15 = vector.broadcast %14 : vector<1x64xf32> to vector<8x64xf32>
    %16 = arith.addf %13, %15 : vector<8x64xf32>
    %cst_16 = arith.constant 0.000000e+00 : f32
    %17 = vector.broadcast %cst_16 : f32 to vector<8x64xf32>
    %18 = arith.maximumf %16, %17 : vector<8x64xf32>
    %c0_17 = arith.constant 0 : index
    %c0_18 = arith.constant 0 : index
    %19 = vector.load %arg8[%c0_17, %c0_18] : memref<64x64xf32, #tpu.memory_space<vmem>>, vector<64x64xf32>
    %cst_19 = arith.constant dense<0.000000e+00> : vector<8x64xf32>
    %20 = tpu.matmul %18, %19, %cst_19 {dimension_numbers = #tpu.dot_dimension_numbers<[1], [0], [0], [1], [0, 0, 1, 1], [], []>} : vector<8x64xf32>, vector<64x64xf32>, vector<8x64xf32> -> vector<8x64xf32>
    %c0_20 = arith.constant 0 : index
    %c0_21 = arith.constant 0 : index
    %21 = vector.load %arg9[%c0_20, %c0_21] : memref<1x64xf32, #tpu.memory_space<vmem>>, vector<1x64xf32>
    %22 = vector.broadcast %21 : vector<1x64xf32> to vector<8x64xf32>
    %23 = arith.addf %20, %22 : vector<8x64xf32>
    %cst_22 = arith.constant 0.000000e+00 : f32
    %24 = vector.broadcast %cst_22 : f32 to vector<8x64xf32>
    %25 = arith.maximumf %23, %24 : vector<8x64xf32>
    %c0_23 = arith.constant 0 : index
    %c0_24 = arith.constant 0 : index
    %26 = vector.load %arg10[%c0_23, %c0_24] : memref<64x64xf32, #tpu.memory_space<vmem>>, vector<64x64xf32>
    %cst_25 = arith.constant dense<0.000000e+00> : vector<8x64xf32>
    %27 = tpu.matmul %25, %26, %cst_25 {dimension_numbers = #tpu.dot_dimension_numbers<[1], [0], [0], [1], [0, 0, 1, 1], [], []>} : vector<8x64xf32>, vector<64x64xf32>, vector<8x64xf32> -> vector<8x64xf32>
    %c0_26 = arith.constant 0 : index
    %c0_27 = arith.constant 0 : index
    %28 = vector.load %arg11[%c0_26, %c0_27] : memref<1x64xf32, #tpu.memory_space<vmem>>, vector<1x64xf32>
    %29 = vector.broadcast %28 : vector<1x64xf32> to vector<8x64xf32>
    %30 = arith.addf %27, %29 : vector<8x64xf32>
    %cst_28 = arith.constant 0.000000e+00 : f32
    %31 = vector.broadcast %cst_28 : f32 to vector<8x64xf32>
    %32 = arith.maximumf %30, %31 : vector<8x64xf32>
    %c0_29 = arith.constant 0 : index
    %c0_30 = arith.constant 0 : index
    %33 = vector.load %arg12[%c0_29, %c0_30] : memref<64x128xf32, #tpu.memory_space<vmem>>, vector<64x128xf32>
    %cst_31 = arith.constant dense<0.000000e+00> : vector<8x128xf32>
    %34 = tpu.matmul %32, %33, %cst_31 {dimension_numbers = #tpu.dot_dimension_numbers<[1], [0], [0], [1], [0, 0, 1, 1], [], []>} : vector<8x64xf32>, vector<64x128xf32>, vector<8x128xf32> -> vector<8x128xf32>
    %c0_32 = arith.constant 0 : index
    %c0_33 = arith.constant 0 : index
    %35 = vector.load %arg13[%c0_32, %c0_33] : memref<4x128xf32, #tpu.memory_space<vmem>>, vector<4x128xf32>
    %cst_34 = arith.constant dense<0.000000e+00> : vector<8x128xf32>
    %36 = tpu.matmul %1, %35, %cst_34 {dimension_numbers = #tpu.dot_dimension_numbers<[1], [0], [0], [1], [0, 0, 1, 1], [], []>} : vector<8x4xf32>, vector<4x128xf32>, vector<8x128xf32> -> vector<8x128xf32>
    %37 = arith.addf %34, %36 : vector<8x128xf32>
    %c0_35 = arith.constant 0 : index
    %c0_36 = arith.constant 0 : index
    %38 = vector.load %arg14[%c0_35, %c0_36] : memref<1x128xf32, #tpu.memory_space<vmem>>, vector<1x128xf32>
    %39 = vector.broadcast %38 : vector<1x128xf32> to vector<8x128xf32>
    %40 = arith.addf %37, %39 : vector<8x128xf32>
    %41 = math.tanh %40 : vector<8x128xf32>
    %c0_37 = arith.constant 0 : index
    %c0_38 = arith.constant 0 : index
    %42 = vector.load %arg15[%c0_37, %c0_38] : memref<128x16xf32, #tpu.memory_space<vmem>>, vector<128x16xf32>
    %cst_39 = arith.constant dense<0.000000e+00> : vector<8x16xf32>
    %43 = tpu.matmul %41, %42, %cst_39 {dimension_numbers = #tpu.dot_dimension_numbers<[1], [0], [0], [1], [0, 0, 1, 1], [], []>} : vector<8x128xf32>, vector<128x16xf32>, vector<8x16xf32> -> vector<8x16xf32>
    %c0_40 = arith.constant 0 : index
    %c0_41 = arith.constant 0 : index
    %44 = vector.load %arg16[%c0_40, %c0_41] : memref<1x16xf32, #tpu.memory_space<vmem>>, vector<1x16xf32>
    %45 = vector.broadcast %44 : vector<1x16xf32> to vector<8x16xf32>
    %46 = arith.addf %43, %45 : vector<8x16xf32>
    %c0_42 = arith.constant 0 : index
    %c0_43 = arith.constant 0 : index
    %47 = vector.load %arg17[%c0_42, %c0_43] : memref<16x128xf32, #tpu.memory_space<vmem>>, vector<16x128xf32>
    %cst_44 = arith.constant dense<0.000000e+00> : vector<8x128xf32>
    %48 = tpu.matmul %46, %47, %cst_44 {dimension_numbers = #tpu.dot_dimension_numbers<[1], [0], [0], [1], [0, 0, 1, 1], [], []>} : vector<8x16xf32>, vector<16x128xf32>, vector<8x128xf32> -> vector<8x128xf32>
    %c0_45 = arith.constant 0 : index
    %c0_46 = arith.constant 0 : index
    %49 = vector.load %arg18[%c0_45, %c0_46] : memref<1x128xf32, #tpu.memory_space<vmem>>, vector<1x128xf32>
    %50 = vector.broadcast %49 : vector<1x128xf32> to vector<8x128xf32>
    %51 = arith.addf %48, %50 : vector<8x128xf32>
    %c0_47 = arith.constant 0 : index
    %c0_48 = arith.constant 0 : index
    %52 = vector.load %arg19[%c0_47, %c0_48] : memref<8x128xf32, #tpu.memory_space<vmem>>, vector<8x128xf32>
    tpu.vector_store %arg19[%c0_47, %c0_48], %51 {strides = array<i32>} : memref<8x128xf32, #tpu.memory_space<vmem>>, vector<8x128xf32>,
    return
  }
  func.func @transform_0(%arg0: i32) -> (i32, i32) {
    %c0_i32 = arith.constant 0 : i32
    %c0_i32_0 = arith.constant 0 : i32
    return %arg0, %c0_i32 : i32, i32
  }
  func.func @transform_1(%arg0: i32) -> (i32, i32) {
    %c0_i32 = arith.constant 0 : i32
    %c0_i32_0 = arith.constant 0 : i32
    return %arg0, %c0_i32 : i32, i32
  }
  func.func @transform_2(%arg0: i32) -> (i32, i32) {
    %c0_i32 = arith.constant 0 : i32
    %c0_i32_0 = arith.constant 0 : i32
    %c0_i32_1 = arith.constant 0 : i32
    return %c0_i32, %c0_i32_0 : i32, i32
  }
  func.func @transform_3(%arg0: i32) -> (i32, i32) {
    %c0_i32 = arith.constant 0 : i32
    %c0_i32_0 = arith.constant 0 : i32
    %c0_i32_1 = arith.constant 0 : i32
    return %c0_i32, %c0_i32_0 : i32, i32
  }
  func.func @transform_4(%arg0: i32) -> (i32, i32) {
    %c0_i32 = arith.constant 0 : i32
    %c0_i32_0 = arith.constant 0 : i32
    %c0_i32_1 = arith.constant 0 : i32
    return %c0_i32, %c0_i32_0 : i32, i32
  }
  func.func @transform_5(%arg0: i32) -> (i32, i32) {
    %c0_i32 = arith.constant 0 : i32
    %c0_i32_0 = arith.constant 0 : i32
    %c0_i32_1 = arith.constant 0 : i32
    return %c0_i32, %c0_i32_0 : i32, i32
  }
  func.func @transform_6(%arg0: i32) -> (i32, i32) {
    %c0_i32 = arith.constant 0 : i32
    %c0_i32_0 = arith.constant 0 : i32
    %c0_i32_1 = arith.constant 0 : i32
    return %c0_i32, %c0_i32_0 : i32, i32
  }
  func.func @transform_7(%arg0: i32) -> (i32, i32) {
    %c0_i32 = arith.constant 0 : i32
    %c0_i32_0 = arith.constant 0 : i32
    %c0_i32_1 = arith.constant 0 : i32
    return %c0_i32, %c0_i32_0 : i32, i32
  }
  func.func @transform_8(%arg0: i32) -> (i32, i32) {
    %c0_i32 = arith.constant 0 : i32
    %c0_i32_0 = arith.constant 0 : i32
    %c0_i32_1 = arith.constant 0 : i32
    return %c0_i32, %c0_i32_0 : i32, i32
  }
  func.func @transform_9(%arg0: i32) -> (i32, i32) {
    %c0_i32 = arith.constant 0 : i32
    %c0_i32_0 = arith.constant 0 : i32
    %c0_i32_1 = arith.constant 0 : i32
    return %c0_i32, %c0_i32_0 : i32, i32
  }
  func.func @transform_10(%arg0: i32) -> (i32, i32) {
    %c0_i32 = arith.constant 0 : i32
    %c0_i32_0 = arith.constant 0 : i32
    %c0_i32_1 = arith.constant 0 : i32
    return %c0_i32, %c0_i32_0 : i32, i32
  }
  func.func @transform_11(%arg0: i32) -> (i32, i32) {
    %c0_i32 = arith.constant 0 : i32
    %c0_i32_0 = arith.constant 0 : i32
    %c0_i32_1 = arith.constant 0 : i32
    return %c0_i32, %c0_i32_0 : i32, i32
  }
  func.func @transform_12(%arg0: i32) -> (i32, i32) {
    %c0_i32 = arith.constant 0 : i32
    %c0_i32_0 = arith.constant 0 : i32
    %c0_i32_1 = arith.constant 0 : i32
    return %c0_i32, %c0_i32_0 : i32, i32
  }
  func.func @transform_13(%arg0: i32) -> (i32, i32) {
    %c0_i32 = arith.constant 0 : i32
    %c0_i32_0 = arith.constant 0 : i32
    %c0_i32_1 = arith.constant 0 : i32
    return %c0_i32, %c0_i32_0 : i32, i32
  }
  func.func @transform_14(%arg0: i32) -> (i32, i32) {
    %c0_i32 = arith.constant 0 : i32
    %c0_i32_0 = arith.constant 0 : i32
    %c0_i32_1 = arith.constant 0 : i32
    return %c0_i32, %c0_i32_0 : i32, i32
  }
  func.func @transform_15(%arg0: i32) -> (i32, i32) {
    %c0_i32 = arith.constant 0 : i32
    %c0_i32_0 = arith.constant 0 : i32
    %c0_i32_1 = arith.constant 0 : i32
    return %c0_i32, %c0_i32_0 : i32, i32
  }
  func.func @transform_16(%arg0: i32) -> (i32, i32) {
    %c0_i32 = arith.constant 0 : i32
    %c0_i32_0 = arith.constant 0 : i32
    %c0_i32_1 = arith.constant 0 : i32
    return %c0_i32, %c0_i32_0 : i32, i32
  }
  func.func @transform_17(%arg0: i32) -> (i32, i32) {
    %c0_i32 = arith.constant 0 : i32
    %c0_i32_0 = arith.constant 0 : i32
    %c0_i32_1 = arith.constant 0 : i32
    return %c0_i32, %c0_i32_0 : i32, i32
  }
  func.func @transform_18(%arg0: i32) -> (i32, i32) {
    %c0_i32 = arith.constant 0 : i32
    %c0_i32_0 = arith.constant 0 : i32
    return %arg0, %c0_i32 : i32, i32
  }
}

</mosaic_0001>

<bundles_post_ra>
// kernel: tpu_custom_call.1
= control target key start
LH: loop header
LB: loop body
LE: loop exit
PB: predicated region body
PF: predicated region fallthrough
CT: control target
= control target key end

     0   :  { %s2397_s0 = inlined_call_operand.hbm [shape: f32[8,96], index: 0, kind: input, shape index: {}]   ;;  %s2398_s1 = inlined_call_operand.hbm [shape: f32[8,4], index: 1, kind: input, shape index: {}]   ;;  %s2399_s2 = inlined_call_operand.hbm [shape: f32[96,128], index: 2, kind: input, shape index: {}]   ;;  %s2400_s3 = inlined_call_operand.hbm [shape: f32[4,128], index: 3, kind: input, shape index: {}]   ;;  %s2401_s4 = inlined_call_operand.hbm [shape: f32[1,128], index: 4, kind: input, shape index: {}]   ;;  %s2402_s5 = inlined_call_operand.hbm [shape: f32[128,64], index: 5, kind: input, shape index: {}]   ;;  %s2403_s6 = inlined_call_operand.hbm [shape: f32[1,64], index: 6, kind: input, shape index: {}]   ;;  %s2404_s7 = inlined_call_operand.hbm [shape: f32[64,64], index: 7, kind: input, shape index: {}]   ;;  %s2405_s8 = inlined_call_operand.hbm [shape: f32[1,64], index: 8, kind: input, shape index: {}]   ;;  %s2406_s9 = inlined_call_operand.hbm [shape: f32[64,64], index: 9, kind: input, shape index: {}]   ;;  %s2407_s10 = inlined_call_operand.hbm [shape: f32[1,64], index: 10, kind: input, shape index: {}]   ;;  %s2408_s11 = inlined_call_operand.hbm [shape: f32[64,128], index: 11, kind: input, shape index: {}]   ;;  %s2409_s12 = inlined_call_operand.hbm [shape: f32[4,128], index: 12, kind: input, shape index: {}]   ;;  %s2410_s13 = inlined_call_operand.hbm [shape: f32[1,128], index: 13, kind: input, shape index: {}]   ;;  %s2411_s14 = inlined_call_operand.hbm [shape: f32[128,16], index: 14, kind: input, shape index: {}]   ;;  %s2412_s15 = inlined_call_operand.hbm [shape: f32[1,16], index: 15, kind: input, shape index: {}]   ;;  %s2413_s16 = inlined_call_operand.hbm [shape: f32[16,128], index: 16, kind: input, shape index: {}]   ;;  %s2414_s17 = inlined_call_operand.hbm [shape: f32[1,128], index: 17, kind: input, shape index: {}]   ;;  %s2415_s18 = inlined_call_operand.hbm [shape: f32[8,128], index: 18, kind: output, shape index: {}]  }
   0x1   :  { %2419 = sst [smem:[#allocation43_spill]] %s2397_s0 }
   0x2   :  { %2420 = sst [smem:[#allocation44_spill]] %s2398_s1 }
   0x3   :  { %2421 = sst [smem:[#allocation45_spill]] %s2399_s2 }
   0x4   :  { %23 = vsyncpa [#allocation3], 0 }
   0x5   :  { %24 = vsyncpa [#allocation6], 0 }
   0x6   :  { %25 = vsyncpa [#allocation9], 0 }
   0x7   :  { %26 = vsyncpa [#allocation12], 0 }
   0x8   :  { %27 = vsyncpa [#allocation15], 0 }
   0x9   :  { %28 = vsyncpa [#allocation18], 0 }
   0xa   :  { %29 = vsyncpa [#allocation21], 0 }
   0xb   :  { %30 = vsyncpa [#allocation24], 0 }
   0xc   :  { %31 = vsyncpa [#allocation27], 0 }
   0xd   :  { %32 = vsyncpa [#allocation30], 0 }
   0xe   :  { %33 = vsyncpa [#allocation4], 0  ;;  %s1935_s27 = smov [#allocation5]   ;;  %s1936_s29 = smov [#allocation8]  }
   0xf   :  { %s50_s28 = sshll.u32 %s1935_s27, 4  ;;  %s72_s30 = sshll.u32 %s1936_s29, 4  ;;  %s51_s28 = int_to_ptr.vmem [resolvable:$true] %s50_s28  ;;  %s73_s30 = int_to_ptr.vmem [resolvable:$true] %s72_s30 }
  0x10   :  { %s2422_s1 = sld [smem:[#allocation44_spill]] }
  0x16   :  { %s1495_s20 = scalar_lea.hbm %s2422_s1, 128 }
  0x17   :  { %p1496_p0 = scmp.ne.s32.totalorder %s2422_s1, %s1495_s20  ;;  %p1499_p1 = scmp.lt.u32.totalorder %s1495_s20, %s2422_s1 }
  0x19   :  { %p1501_p2 = pnand %p1499_p1, %p1496_p0 }
  0x1b   :  { %1504 = shalt.err (!%p1501_p2)
}
  0x1c   :  { %s1505_s24 = scalar_lea.vmem %s51_s28, 128  ;;  %p1510_p4 = scmp.lt.s32.totalorder %s51_s28, %s51_s28 }
  0x1d   :  { %p1506_p3 = scmp.ne.s32.totalorder %s51_s28, %s1505_s24  ;;  %p1511_p5 = scmp.lt.s32.totalorder %s1505_s24, %s1505_s24 }
  0x1f   :  { %p1512_p6 = por %p1511_p5, %p1510_p4 }
  0x21   :  { %p1513_p7 = pnand %p1512_p6, %p1506_p3 }
  0x23   :  { %1516 = shalt.err (!%p1513_p7)
}
  0x24   :  { %53 = dma.hbm_to_vmem [thread:$0]  %s2422_s1, 128, %s51_s28, [#allocation6]  }
  0x25   :  { %s1517_s0 = scalar_lea.hbm %s2400_s3, 64 }
  0x26   :  { %p1518_p8 = scmp.ne.s32.totalorder %s2400_s3, %s1517_s0  ;;  %p1521_p9 = scmp.lt.u32.totalorder %s1517_s0, %s2400_s3 }
  0x28   :  { %p1523_p10 = pnand %p1521_p9, %p1518_p8 }
  0x2a   :  { %1526 = shalt.err (!%p1523_p10)
}
  0x2b   :  { %s1527_s2 = scalar_lea.vmem %s73_s30, 64  ;;  %p1532_p12 = scmp.lt.s32.totalorder %s73_s30, %s73_s30 }
  0x2c   :  { %p1528_p11 = scmp.ne.s32.totalorder %s73_s30, %s1527_s2  ;;  %p1533_p13 = scmp.lt.s32.totalorder %s1527_s2, %s1527_s2 }
  0x2e   :  { %p1534_p0 = por %p1533_p13, %p1532_p12 }
  0x30   :  { %p1535_p1 = pnand %p1534_p0, %p1528_p11 }
  0x32   :  { %1538 = shalt.err (!%p1535_p1)
}
  0x33   :  { %75 = dma.hbm_to_vmem [thread:$0]  %s2400_s3, 64, %s73_s30, [#allocation9]  }
  0x34   :  { %s1937_s23 = smov [#allocation11]   ;;  %s1938_s25 = smov [#allocation14]  }
  0x35   :  { %s91_s24 = sshll.u32 %s1937_s23, 4  ;;  %s113_s26 = sshll.u32 %s1938_s25, 4  ;;  %s92_s24 = int_to_ptr.vmem [resolvable:$true] %s91_s24  ;;  %s2078_s26 = int_to_ptr.vmem [resolvable:$true] %s113_s26 }
  0x36   :  { %s1539_s0 = scalar_lea.hbm %s2402_s5, 2048 }
  0x37   :  { %p1540_p2 = scmp.ne.s32.totalorder %s2402_s5, %s1539_s0  ;;  %p1543_p3 = scmp.lt.u32.totalorder %s1539_s0, %s2402_s5 }
  0x39   :  { %p1545_p4 = pnand %p1543_p3, %p1540_p2 }
  0x3b   :  { %1548 = shalt.err (!%p1545_p4)
}
  0x3c   :  { %s1549_s3 = scalar_lea.vmem %s92_s24, 2048  ;;  %p1554_p6 = scmp.lt.s32.totalorder %s92_s24, %s92_s24 }
  0x3d   :  { %p1550_p5 = scmp.ne.s32.totalorder %s92_s24, %s1549_s3  ;;  %p1555_p7 = scmp.lt.s32.totalorder %s1549_s3, %s1549_s3 }
  0x3f   :  { %p1556_p8 = por %p1555_p7, %p1554_p6 }
  0x41   :  { %p1557_p9 = pnand %p1556_p8, %p1550_p5 }
  0x43   :  { %1560 = shalt.err (!%p1557_p9)
}
  0x44   :  { %s1939_s30 = smov 128   ;;  %s1940_s2 = smov 8  }
  0x45   :  { %97 = dma.hbm_to_vmem [thread:$0]  %s2402_s5, 2048, %s92_s24, [#allocation12], %s1939_s30, %s1939_s30, %s1940_s2  }
  0x46   :  { %s1561_s27 = scalar_lea.hbm %s2404_s7, 1024 }
  0x47   :  { %p1562_p10 = scmp.ne.s32.totalorder %s2404_s7, %s1561_s27  ;;  %p1565_p11 = scmp.lt.u32.totalorder %s1561_s27, %s2404_s7 }
  0x49   :  { %p1567_p12 = pnand %p1565_p11, %p1562_p10 }
  0x4b   :  { %1570 = shalt.err (!%p1567_p12)
}
  0x4c   :  { %s1571_s20 = scalar_lea.vmem %s2078_s26, 1024  ;;  %p1576_p0 = scmp.lt.s32.totalorder %s2078_s26, %s2078_s26 }
  0x4d   :  { %p1572_p13 = scmp.ne.s32.totalorder %s2078_s26, %s1571_s20  ;;  %p1577_p1 = scmp.lt.s32.totalorder %s1571_s20, %s1571_s20 }
  0x4f   :  { %p1578_p2 = por %p1577_p1, %p1576_p0 }
  0x51   :  { %p1579_p3 = pnand %p1578_p2, %p1572_p13 }
  0x53   :  { %1582 = shalt.err (!%p1579_p3)
}
  0x54   :  { %119 = dma.hbm_to_vmem [thread:$0]  %s2404_s7, 1024, %s2078_s26, [#allocation15], %s1939_s30, %s1939_s30, %s1940_s2  }
  0x55   :  { %s1941_s22 = smov [#allocation17]   ;;  %s1942_s28 = smov [#allocation20]  }
  0x56   :  { %s135_s3 = sshll.u32 %s1941_s22, 4  ;;  %s157_s1 = sshll.u32 %s1942_s28, 4  ;;  %s136_s3 = int_to_ptr.vmem [resolvable:$true] %s135_s3  ;;  %s2115_s1 = int_to_ptr.vmem [resolvable:$true] %s157_s1 }
  0x57   :  { %s1583_s27 = scalar_lea.hbm %s2406_s9, 1024 }
  0x58   :  { %p1584_p4 = scmp.ne.s32.totalorder %s2406_s9, %s1583_s27  ;;  %p1587_p5 = scmp.lt.u32.totalorder %s1583_s27, %s2406_s9 }
  0x5a   :  { %p1589_p6 = pnand %p1587_p5, %p1584_p4 }
  0x5c   :  { %1592 = shalt.err (!%p1589_p6)
}
  0x5d   :  { %s1593_s7 = scalar_lea.vmem %s136_s3, 1024  ;;  %p1598_p8 = scmp.lt.s32.totalorder %s136_s3, %s136_s3 }
  0x5e   :  { %p1594_p7 = scmp.ne.s32.totalorder %s136_s3, %s1593_s7  ;;  %p1599_p9 = scmp.lt.s32.totalorder %s1593_s7, %s1593_s7 }
  0x60   :  { %p1600_p10 = por %p1599_p9, %p1598_p8 }
  0x62   :  { %p1601_p11 = pnand %p1600_p10, %p1594_p7 }
  0x64   :  { %1604 = shalt.err (!%p1601_p11)
}
  0x65   :  { %141 = dma.hbm_to_vmem [thread:$0]  %s2406_s9, 1024, %s136_s3, [#allocation18], %s1939_s30, %s1939_s30, %s1940_s2  }
  0x66   :  { %s1605_s22 = scalar_lea.hbm %s2408_s11, 1024 }
  0x67   :  { %p1606_p12 = scmp.ne.s32.totalorder %s2408_s11, %s1605_s22  ;;  %p1609_p13 = scmp.lt.u32.totalorder %s1605_s22, %s2408_s11 }
  0x69   :  { %p1611_p0 = pnand %p1609_p13, %p1606_p12 }
  0x6b   :  { %1614 = shalt.err (!%p1611_p0)
}
  0x6c   :  { %s1615_s29 = scalar_lea.vmem %s2115_s1, 1024  ;;  %p1620_p2 = scmp.lt.s32.totalorder %s2115_s1, %s2115_s1 }
  0x6d   :  { %p1616_p1 = scmp.ne.s32.totalorder %s2115_s1, %s1615_s29  ;;  %p1621_p3 = scmp.lt.s32.totalorder %s1615_s29, %s1615_s29 }
  0x6f   :  { %p1622_p4 = por %p1621_p3, %p1620_p2 }
  0x71   :  { %p1623_p5 = pnand %p1622_p4, %p1616_p1 }
  0x73   :  { %1626 = shalt.err (!%p1623_p5)
}
  0x74   :  { %163 = dma.hbm_to_vmem [thread:$0]  %s2408_s11, 1024, %s2115_s1, [#allocation21], %s1939_s30, %s1939_s30, %s1940_s2  }
  0x75   :  { %s1943_s0 = smov [#allocation23]   ;;  %s1944_s21 = smov [#allocation26]  }
  0x76   :  { %s180_s19 = sshll.u32 %s1943_s0, 4  ;;  %s202_s7 = sshll.u32 %s1944_s21, 4  ;;  %s181_s19 = int_to_ptr.vmem [resolvable:$true] %s180_s19  ;;  %s203_s7 = int_to_ptr.vmem [resolvable:$true] %s202_s7 }
  0x77   :  { %s1627_s5 = scalar_lea.hbm %s2410_s13, 16 }
  0x78   :  { %p1628_p6 = scmp.ne.s32.totalorder %s2410_s13, %s1627_s5  ;;  %p1631_p7 = scmp.lt.u32.totalorder %s1627_s5, %s2410_s13 }
  0x7a   :  { %p1633_p8 = pnand %p1631_p7, %p1628_p6 }
  0x7c   :  { %1636 = shalt.err (!%p1633_p8)
}
  0x7d   :  { %s1637_s11 = scalar_lea.vmem %s181_s19, 16  ;;  %s1641_s1 = scalar_lea.vmem %s181_s19, 32 }
  0x7e   :  { %p1638_p9 = scmp.ne.s32.totalorder %s181_s19, %s1637_s11  ;;  %p1642_p10 = scmp.lt.s32.totalorder %s181_s19, %s181_s19 }
  0x7f   :  { %p1643_p11 = scmp.lt.s32.totalorder %s1641_s1, %s1637_s11 }
  0x81   :  { %p1644_p12 = por %p1643_p11, %p1642_p10 }
  0x83   :  { %p1645_p13 = pnand %p1644_p12, %p1638_p9 }
  0x85   :  { %1648 = shalt.err (!%p1645_p13)
}
  0x86   :  { %183 = dma.hbm_to_vmem [thread:$0]  %s2410_s13, 16, %s181_s19, [#allocation24]  }
  0x87   :  { %s1649_s3 = scalar_lea.hbm %s2412_s15, 16 }
  0x88   :  { %p1650_p0 = scmp.ne.s32.totalorder %s2412_s15, %s1649_s3  ;;  %p1653_p1 = scmp.lt.u32.totalorder %s1649_s3, %s2412_s15 }
  0x8a   :  { %p1655_p2 = pnand %p1653_p1, %p1650_p0 }
  0x8c   :  { %1658 = shalt.err (!%p1655_p2)
}
  0x8d   :  { %s1659_s5 = scalar_lea.vmem %s203_s7, 16  ;;  %s1663_s24 = scalar_lea.vmem %s203_s7, 32 }
  0x8e   :  { %p1660_p3 = scmp.ne.s32.totalorder %s203_s7, %s1659_s5  ;;  %p1664_p4 = scmp.lt.s32.totalorder %s203_s7, %s203_s7 }
  0x8f   :  { %p1665_p5 = scmp.lt.s32.totalorder %s1663_s24, %s1659_s5 }
  0x91   :  { %p1666_p6 = por %p1665_p5, %p1664_p4 }
  0x93   :  { %p1667_p7 = pnand %p1666_p6, %p1660_p3 }
  0x95   :  { %1670 = shalt.err (!%p1667_p7)
}
  0x96   :  { %205 = dma.hbm_to_vmem [thread:$0]  %s2412_s15, 16, %s203_s7, [#allocation27]  }
  0x97   :  { %s1945_s22 = smov [#allocation2]   ;;  %s1946_s23 = smov [#allocation7]  }
  0x98   :  { %s40_s28 = sshll.u32 %s1945_s22, 4  ;;  %s59_s11 = sshll.u32 %s1946_s23, 4  ;;  %s41_s28 = int_to_ptr.vmem [resolvable:$true] %s40_s28  ;;  %s2176_s11 = int_to_ptr.vmem [resolvable:$true] %s59_s11 }
  0x99   :  { %s2423_s27 = sld [smem:[#allocation43_spill]] }
  0x9f   :  { %s1671_s29 = scalar_lea.hbm %s2423_s27, 128 }
  0xa0   :  { %p1672_p8 = scmp.ne.s32.totalorder %s2423_s27, %s1671_s29  ;;  %p1675_p9 = scmp.lt.u32.totalorder %s1671_s29, %s2423_s27 }
  0xa2   :  { %p1677_p10 = pnand %p1675_p9, %p1672_p8 }
  0xa4   :  { %1680 = shalt.err (!%p1677_p10)
}
  0xa5   :  { %s1681_s15 = scalar_lea.vmem %s41_s28, 128  ;;  %p1686_p12 = scmp.lt.s32.totalorder %s41_s28, %s41_s28 }
  0xa6   :  { %p1682_p11 = scmp.ne.s32.totalorder %s41_s28, %s1681_s15  ;;  %p1687_p13 = scmp.lt.s32.totalorder %s1681_s15, %s1681_s15 }
  0xa8   :  { %p1688_p0 = por %p1687_p13, %p1686_p12 }
  0xaa   :  { %p1689_p1 = pnand %p1688_p0, %p1682_p11 }
  0xac   :  { %1692 = shalt.err (!%p1689_p1)
}
  0xad   :  { %43 = dma.hbm_to_vmem [thread:$0]  %s2423_s27, 128, %s41_s28, [#allocation3]  }
  0xae   :  { %s2424_s24 = sld [smem:[#allocation45_spill]] }
  0xb4   :  { %s1693_s13 = scalar_lea.hbm %s2424_s24, 1536 }
  0xb5   :  { %p1694_p2 = scmp.ne.s32.totalorder %s2424_s24, %s1693_s13  ;;  %p1697_p3 = scmp.lt.u32.totalorder %s1693_s13, %s2424_s24 }
  0xb7   :  { %p1699_p4 = pnand %p1697_p3, %p1694_p2 }
  0xb9   :  { %1702 = shalt.err (!%p1699_p4)
}
  0xba   :  { %s1703_s25 = scalar_lea.vmem %s2176_s11, 1536  ;;  %p1708_p6 = scmp.lt.s32.totalorder %s2176_s11, %s2176_s11 }
  0xbb   :  { %p1704_p5 = scmp.ne.s32.totalorder %s2176_s11, %s1703_s25  ;;  %p1709_p7 = scmp.lt.s32.totalorder %s1703_s25, %s1703_s25 }
  0xbd   :  { %p1710_p8 = por %p1709_p7, %p1708_p6 }
  0xbf   :  { %p1711_p9 = pnand %p1710_p8, %p1704_p5 }
  0xc1   :  { %1714 = shalt.err (!%p1711_p9)
}
  0xc2   :  { %65 = dma.hbm_to_vmem [thread:$0]  %s2424_s24, 1536, %s2176_s11, [#allocation6], %s1939_s30, %s1939_s30, %s1940_s2  }
  0xc3   :  { %s1947_s29 = smov [#allocation10]   ;;  %s1948_s3 = smov [#allocation13]  }
  0xc4   :  { %s82_s9 = sshll.u32 %s1947_s29, 4  ;;  %s104_s0 = sshll.u32 %s1948_s3, 4  ;;  %s83_s9 = int_to_ptr.vmem [resolvable:$true] %s82_s9  ;;  %s105_s0 = int_to_ptr.vmem [resolvable:$true] %s104_s0 }
  0xc5   :  { %s1715_s7 = scalar_lea.hbm %s2401_s4, 16 }
  0xc6   :  { %p1716_p10 = scmp.ne.s32.totalorder %s2401_s4, %s1715_s7  ;;  %p1719_p11 = scmp.lt.u32.totalorder %s1715_s7, %s2401_s4 }
  0xc8   :  { %p1721_p12 = pnand %p1719_p11, %p1716_p10 }
  0xca   :  { %1724 = shalt.err (!%p1721_p12)
}
  0xcb   :  { %s1725_s11 = scalar_lea.vmem %s83_s9, 16  ;;  %s1729_s24 = scalar_lea.vmem %s83_s9, 32 }
  0xcc   :  { %p1726_p13 = scmp.ne.s32.totalorder %s83_s9, %s1725_s11  ;;  %p1730_p0 = scmp.lt.s32.totalorder %s83_s9, %s83_s9 }
  0xcd   :  { %p1731_p1 = scmp.lt.s32.totalorder %s1729_s24, %s1725_s11 }
  0xcf   :  { %p1732_p2 = por %p1731_p1, %p1730_p0 }
  0xd1   :  { %p1733_p3 = pnand %p1732_p2, %p1726_p13 }
  0xd3   :  { %1736 = shalt.err (!%p1733_p3)
}
  0xd4   :  { %85 = dma.hbm_to_vmem [thread:$0]  %s2401_s4, 16, %s83_s9, [#allocation9]  }
  0xd5   :  { %s1737_s25 = scalar_lea.hbm %s2403_s6, 16 }
  0xd6   :  { %p1738_p4 = scmp.ne.s32.totalorder %s2403_s6, %s1737_s25  ;;  %p1741_p5 = scmp.lt.u32.totalorder %s1737_s25, %s2403_s6 }
  0xd8   :  { %p1743_p6 = pnand %p1741_p5, %p1738_p4 }
  0xda   :  { %1746 = shalt.err (!%p1743_p6)
}
  0xdb   :  { %s1747_s21 = scalar_lea.vmem %s105_s0, 16  ;;  %s1751_s15 = scalar_lea.vmem %s105_s0, 32 }
  0xdc   :  { %p1748_p7 = scmp.ne.s32.totalorder %s105_s0, %s1747_s21  ;;  %p1752_p8 = scmp.lt.s32.totalorder %s105_s0, %s105_s0 }
  0xdd   :  { %p1753_p9 = scmp.lt.s32.totalorder %s1751_s15, %s1747_s21 }
  0xdf   :  { %p1754_p10 = por %p1753_p9, %p1752_p8 }
  0xe1   :  { %p1755_p11 = pnand %p1754_p10, %p1748_p7 }
  0xe3   :  { %1758 = shalt.err (!%p1755_p11)
}
  0xe4   :  { %107 = dma.hbm_to_vmem [thread:$0]  %s2403_s6, 16, %s105_s0, [#allocation12]  }
  0xe5   :  { %s1949_s7 = smov [#allocation16]   ;;  %s1950_s20 = smov [#allocation19]  }
  0xe6   :  { %s126_s26 = sshll.u32 %s1949_s7, 4  ;;  %s148_s5 = sshll.u32 %s1950_s20, 4  ;;  %s127_s26 = int_to_ptr.vmem [resolvable:$true] %s126_s26  ;;  %s149_s5 = int_to_ptr.vmem [resolvable:$true] %s148_s5 }
  0xe7   :  { %s1759_s24 = scalar_lea.hbm %s2405_s8, 16 }
  0xe8   :  { %p1760_p12 = scmp.ne.s32.totalorder %s2405_s8, %s1759_s24  ;;  %p1763_p13 = scmp.lt.u32.totalorder %s1759_s24, %s2405_s8 }
  0xea   :  { %p1765_p0 = pnand %p1763_p13, %p1760_p12 }
  0xec   :  { %1768 = shalt.err (!%p1765_p0)
}
  0xed   :  { %s1769_s6 = scalar_lea.vmem %s127_s26, 16  ;;  %s1773_s0 = scalar_lea.vmem %s127_s26, 32 }
  0xee   :  { %p1770_p1 = scmp.ne.s32.totalorder %s127_s26, %s1769_s6  ;;  %p1774_p2 = scmp.lt.s32.totalorder %s127_s26, %s127_s26 }
  0xef   :  { %p1775_p3 = scmp.lt.s32.totalorder %s1773_s0, %s1769_s6 }
  0xf1   :  { %p1776_p4 = por %p1775_p3, %p1774_p2 }
  0xf3   :  { %p1777_p5 = pnand %p1776_p4, %p1770_p1 }
  0xf5   :  { %1780 = shalt.err (!%p1777_p5)
}
  0xf6   :  { %129 = dma.hbm_to_vmem [thread:$0]  %s2405_s8, 16, %s127_s26, [#allocation15]  }
  0xf7   :  { %s1781_s3 = scalar_lea.hbm %s2407_s10, 16 }
  0xf8   :  { %p1782_p6 = scmp.ne.s32.totalorder %s2407_s10, %s1781_s3  ;;  %p1785_p7 = scmp.lt.u32.totalorder %s1781_s3, %s2407_s10 }
  0xfa   :  { %p1787_p8 = pnand %p1785_p7, %p1782_p6 }
  0xfc   :  { %1790 = shalt.err (!%p1787_p8)
}
  0xfd   :  { %s1791_s7 = scalar_lea.vmem %s149_s5, 16  ;;  %s1795_s20 = scalar_lea.vmem %s149_s5, 32 }
  0xfe   :  { %p1792_p9 = scmp.ne.s32.totalorder %s149_s5, %s1791_s7  ;;  %p1796_p10 = scmp.lt.s32.totalorder %s149_s5, %s149_s5 }
  0xff   :  { %p1797_p11 = scmp.lt.s32.totalorder %s1795_s20, %s1791_s7 }
 0x101   :  { %p1798_p12 = por %p1797_p11, %p1796_p10 }
 0x103   :  { %p1799_p13 = pnand %p1798_p12, %p1792_p9 }
 0x105   :  { %1802 = shalt.err (!%p1799_p13)
}
 0x106   :  { %151 = dma.hbm_to_vmem [thread:$0]  %s2407_s10, 16, %s149_s5, [#allocation18]  }
 0x107   :  { %s1951_s13 = smov [#allocation22]   ;;  %s1952_s24 = smov [#allocation25]  }
 0x108   :  { %s170_s11 = sshll.u32 %s1951_s13, 4  ;;  %s189_s19 = sshll.u32 %s1952_s24, 4  ;;  %s171_s11 = int_to_ptr.vmem [resolvable:$true] %s170_s11  ;;  %s2258_s19 = int_to_ptr.vmem [resolvable:$true] %s189_s19 }
 0x109   :  { %s1803_s1 = scalar_lea.hbm %s2409_s12, 64 }
 0x10a   :  { %p1804_p0 = scmp.ne.s32.totalorder %s2409_s12, %s1803_s1  ;;  %p1807_p1 = scmp.lt.u32.totalorder %s1803_s1, %s2409_s12 }
 0x10c   :  { %p1809_p2 = pnand %p1807_p1, %p1804_p0 }
 0x10e   :  { %1812 = shalt.err (!%p1809_p2)
}
 0x10f   :  { %s1813_s10 = scalar_lea.vmem %s171_s11, 64  ;;  %p1818_p4 = scmp.lt.s32.totalorder %s171_s11, %s171_s11 }
 0x110   :  { %p1814_p3 = scmp.ne.s32.totalorder %s171_s11, %s1813_s10  ;;  %p1819_p5 = scmp.lt.s32.totalorder %s1813_s10, %s1813_s10 }
 0x112   :  { %p1820_p6 = por %p1819_p5, %p1818_p4 }
 0x114   :  { %p1821_p7 = pnand %p1820_p6, %p1814_p3 }
 0x116   :  { %1824 = shalt.err (!%p1821_p7)
}
 0x117   :  { %173 = dma.hbm_to_vmem [thread:$0]  %s2409_s12, 64, %s171_s11, [#allocation21]  }
 0x118   :  { %s1825_s21 = scalar_lea.hbm %s2411_s14, 2048 }
 0x119   :  { %p1826_p8 = scmp.ne.s32.totalorder %s2411_s14, %s1825_s21  ;;  %p1829_p9 = scmp.lt.u32.totalorder %s1825_s21, %s2411_s14 }
 0x11b   :  { %p1831_p10 = pnand %p1829_p9, %p1826_p8 }
 0x11d   :  { %1834 = shalt.err (!%p1831_p10)
}
 0x11e   :  { %s1835_s20 = scalar_lea.vmem %s2258_s19, 2048  ;;  %p1840_p12 = scmp.lt.s32.totalorder %s2258_s19, %s2258_s19 }
 0x11f   :  { %p1836_p11 = scmp.ne.s32.totalorder %s2258_s19, %s1835_s20  ;;  %p1841_p13 = scmp.lt.s32.totalorder %s1835_s20, %s1835_s20 }
 0x121   :  { %p1842_p0 = por %p1841_p13, %p1840_p12 }
 0x123   :  { %p1843_p1 = pnand %p1842_p0, %p1836_p11 }
 0x125   :  { %1846 = shalt.err (!%p1843_p1)
}
 0x126   :  { %195 = dma.hbm_to_vmem [thread:$0]  %s2411_s14, 2048, %s2258_s19, [#allocation24], %s1939_s30, %s1939_s30, %s1940_s2  }
 0x127   :  { %s1953_s26 = smov [#allocation28]   ;;  %s1954_s11 = smov [#allocation29]  }
 0x128   :  { %s211_s13 = sshll.u32 %s1953_s26, 4  ;;  %s224_s24 = sshll.u32 %s1954_s11, 4  ;;  %s212_s13 = int_to_ptr.vmem [resolvable:$true] %s211_s13  ;;  %s225_s24 = int_to_ptr.vmem [resolvable:$true] %s224_s24 }
 0x129   :  { %s1847_s1 = scalar_lea.hbm %s2413_s16, 256 }
 0x12a   :  { %p1848_p2 = scmp.ne.s32.totalorder %s2413_s16, %s1847_s1  ;;  %p1851_p3 = scmp.lt.u32.totalorder %s1847_s1, %s2413_s16 }
 0x12c   :  { %p1853_p4 = pnand %p1851_p3, %p1848_p2 }
 0x12e   :  { %1856 = shalt.err (!%p1853_p4)
}
 0x12f   :  { %s1857_s14 = scalar_lea.vmem %s212_s13, 256  ;;  %p1862_p6 = scmp.lt.s32.totalorder %s212_s13, %s212_s13 }
 0x130   :  { %p1858_p5 = scmp.ne.s32.totalorder %s212_s13, %s1857_s14  ;;  %p1863_p7 = scmp.lt.s32.totalorder %s1857_s14, %s1857_s14 }
 0x132   :  { %p1864_p8 = por %p1863_p7, %p1862_p6 }
 0x134   :  { %p1865_p9 = pnand %p1864_p8, %p1858_p5 }
 0x136   :  { %1868 = shalt.err (!%p1865_p9)
}
 0x137   :  { %217 = dma.hbm_to_vmem [thread:$0]  %s2413_s16, 256, %s212_s13, [#allocation27], %s1939_s30, %s1939_s30, %s1940_s2  }
 0x138   :  { %s1869_s29 = scalar_lea.hbm %s2414_s17, 16 }
 0x139   :  { %p1870_p10 = scmp.ne.s32.totalorder %s2414_s17, %s1869_s29  ;;  %p1873_p11 = scmp.lt.u32.totalorder %s1869_s29, %s2414_s17 }
 0x13b   :  { %p1875_p12 = pnand %p1873_p11, %p1870_p10 }
 0x13d   :  { %1878 = shalt.err (!%p1875_p12)
}
 0x13e   :  { %s1879_s9 = scalar_lea.vmem %s225_s24, 16  ;;  %s1883_s7 = scalar_lea.vmem %s225_s24, 32 }
 0x13f   :  { %p1880_p13 = scmp.ne.s32.totalorder %s225_s24, %s1879_s9  ;;  %p1884_p0 = scmp.lt.s32.totalorder %s225_s24, %s225_s24 }
 0x140   :  { %p1885_p1 = scmp.lt.s32.totalorder %s1883_s7, %s1879_s9 }
 0x142   :  { %p1886_p2 = por %p1885_p1, %p1884_p0 }
 0x144   :  { %p1887_p3 = pnand %p1886_p2, %p1880_p13 }
 0x146   :  { %1890 = shalt.err (!%p1887_p3)
}
 0x147   :  { %227 = dma.hbm_to_vmem [thread:$0]  %s2414_s17, 16, %s225_s24, [#allocation30]  }
 0x148   :  { %1913 = dma.done.wait [#allocation3], 128  }
 0x149   :  { %1914 = vsyncadd [#allocation3], 4294967168 }
 0x14a   :  { %1915 = dma.done.wait [#allocation6], 1664  }
 0x14b   :  { %1916 = vsyncadd [#allocation6], 4294965632 }
 0x14c   :  { %1917 = dma.done.wait [#allocation9], 80  }
 0x14d   :  { %1918 = vsyncadd [#allocation9], 4294967216 }
 0x14e   :  { %1919 = dma.done.wait [#allocation12], 2064  }
 0x14f   :  { %1920 = vsyncadd [#allocation12], 4294965232 }
 0x150   :  { %1921 = dma.done.wait [#allocation15], 1040  }
 0x151   :  { %1922 = vsyncadd [#allocation15], 4294966256 }
 0x152   :  { %1923 = dma.done.wait [#allocation18], 1040  }
 0x153   :  { %1924 = vsyncadd [#allocation18], 4294966256 }
 0x154   :  { %1925 = dma.done.wait [#allocation21], 1088  }
 0x155   :  { %1926 = vsyncadd [#allocation21], 4294966208 }
 0x156   :  { %1927 = dma.done.wait [#allocation24], 2064  }
 0x157   :  { %1928 = vsyncadd [#allocation24], 4294965232 }
 0x158   :  { %1929 = dma.done.wait [#allocation27], 272  }
 0x159   :  { %1930 = vsyncadd [#allocation27], 4294967024 }
 0x15a   :  { %1931 = dma.done.wait [#allocation30], 16  }
 0x15b   :  { %1932 = vsyncadd [#allocation30], 4294967280  ;;  %v1955_v0 = vmov 0.0   ;;  %vm1956_vm0 = vmmov 0   ;;  %v1957_v1 = vmov 0.0|0.0   ;;  %vm301_vm1 = vcmask 1043456  }
 0x15c   :  { %1193 = vmatprep.subr.mxu1 %v1955_v0  ;;  %1195 = vmatprep.mubr.msk.f32.mxu1 %vm1956_vm0, %v1955_v0  ;;  %vm297_vm2 = vcmask 31744   ;;  %v296_v2 = vld [vmem:[#allocation8] sm:$0xf]  ;;  %v2325_v3 = vld [vmem:[#allocation5] sm:$0xff]  ;;  %v285_v5 = vld [vmem:[#allocation7 + $0x8] sm:$0xff]  ;;  %vm375_vm3 = vcmask 785408  }
 0x15d   :  { %1382 = vmatprep.subr.bf16.mxu0 %v1957_v1  ;;  %1257 = vmatprep.mubr.msk.f32.mxu0 %vm1956_vm0, %v1955_v0  ;;  %v284_v4 = vld [vmem:[#allocation7] sm:$0xff]  ;;  %v286_v6 = vld [vmem:[#allocation7 + $0x10] sm:$0xff]  ;;  %v287_v7 = vld [vmem:[#allocation7 + $0x18] sm:$0xff]  ;;  %vm567_vm4 = vcmask 523264   ;;  %vm997_vm5 = vcmask 130048   ;;  %s1958_s17 = smov [#allocation31]  }
 0x15e   :  { %1194 = vmatpush3.msk.msra.mxu1 %vm301_vm1, %v296_v2  ;;  %v1365_v8 = vpack.c.bf16 %v285_v5, %v284_v4  ;;  %v1368_v9 = vpack.c.bf16 %v287_v7, %v286_v6  ;;  %v288_v10 = vld [vmem:[#allocation7 + $0x20] sm:$0xff]  ;;  %v289_v11 = vld [vmem:[#allocation7 + $0x28] sm:$0xff]  ;;  %v290_v13 = vld [vmem:[#allocation7 + $0x30] sm:$0xff]  ;;  %s1078_s2 = sshll.u32 %s1958_s17, 4  ;;  %s1079_s2 = int_to_ptr.vmem [resolvable:$true] %s1078_s2 }
 0x15f   :  { %1196 = vmatmul.mubr.msk.f32.vlgmr.msra.gmra.mrb[0].mxu1 %vm297_vm2, %v2325_v3  ;;  %1364 = vmatprep.subr.bf16.mxu1 %v1957_v1  ;;  %v1371_v12 = vpack.c.bf16 %v289_v11, %v288_v10  ;;  %v291_v14 = vld [vmem:[#allocation7 + $0x38] sm:$0xff]  ;;  %v292_v16 = vld [vmem:[#allocation7 + $0x40] sm:$0xff]  ;;  %v293_v17 = vld [vmem:[#allocation7 + $0x48] sm:$0xff]  ;;  %s1891_s20 = scalar_lea.vmem %s1079_s2, 128  ;;  %p1896_p5 = scmp.lt.s32.totalorder %s1079_s2, %s1079_s2 }
 0x160   :  { %1222 = vmatprep.mubr.msk.f32.mxu1 %vm1956_vm0, %v1955_v0  ;;  %1366 = vmatpush3.bf16.msra.mxu1 %v1365_v8  ;;  %v1374_v15 = vpack.c.bf16 %v291_v14, %v290_v13  ;;  %v1377_v18 = vpack.c.bf16 %v293_v17, %v292_v16  ;;  %v294_v19 = vld [vmem:[#allocation7 + $0x50] sm:$0xff]  ;;  %v295_v20 = vld [vmem:[#allocation7 + $0x58] sm:$0xff]  ;;  %v458_v23 = vld [vmem:[#allocation11] sm:$0xff]  ;;  %p1892_p4 = scmp.ne.s32.totalorder %s1079_s2, %s1891_s20  ;;  %p1897_p6 = scmp.lt.s32.totalorder %s1891_s20, %s1891_s20 }
 0x161   :  { %1367 = vmatprep.subr.bf16.mxu1 %v1957_v1  ;;  %v1380_v21 = vpack.c.bf16 %v295_v20, %v294_v19  ;;  %v282_v22 = vld [vmem:[#allocation2] sm:$0xff]  ;;  %v461_v27 = vld [vmem:[#allocation11 + $0x18] sm:$0xff]  ;;  %v462_v29 = vld [vmem:[#allocation11 + $0x20] sm:$0xff] }
 0x162   :  { %v459_v24 = vld [vmem:[#allocation11 + $0x8] sm:$0xff]  ;;  %v460_v26 = vld [vmem:[#allocation11 + $0x10] sm:$0xff]  ;;  %v465_v33 = vld [vmem:[#allocation11 + $0x38] sm:$0xff]  ;;  %p1898_p7 = por %p1897_p6, %p1896_p5 }
 0x163   :  { %v1383_v25 = vpack.c.bf16 %v459_v24, %v458_v23  ;;  %v1386_v28 = vpack.c.bf16 %v461_v27, %v460_v26  ;;  %v463_v30 = vld [vmem:[#allocation11 + $0x28] sm:$0xff]  ;;  %v464_v32 = vld [vmem:[#allocation11 + $0x30] sm:$0xff]  ;;  %v466_v35 = vld [vmem:[#allocation11 + $0x40] sm:$0xff] }
 0x164   :  { %1369 = vmatpush3.bf16.msra.mxu1 %v1368_v9  ;;  %v1389_v31 = vpack.c.bf16 %v463_v30, %v462_v29  ;;  %v1392_v34 = vpack.c.bf16 %v465_v33, %v464_v32  ;;  %v467_v36 = vld [vmem:[#allocation11 + $0x48] sm:$0xff]  ;;  %v468_v38 = vld [vmem:[#allocation11 + $0x50] sm:$0xff]  ;;  %v469_v39 = vld [vmem:[#allocation11 + $0x58] sm:$0xff]  ;;  %p1899_p8 = pnand %p1898_p7, %p1892_p4 }
 0x165   :  { %1370 = vmatprep.subr.bf16.mxu1 %v1957_v1  ;;  %1384 = vmatpush3.bf16.msra.mxu0 %v1383_v25  ;;  %v1395_v37 = vpack.c.bf16 %v467_v36, %v466_v35  ;;  %v1398_v40 = vpack.c.bf16 %v469_v39, %v468_v38  ;;  %v470_v41 = vld [vmem:[#allocation11 + $0x60] sm:$0xff]  ;;  %v471_v42 = vld [vmem:[#allocation11 + $0x68] sm:$0xff]  ;;  %v472_v44 = vld [vmem:[#allocation11 + $0x70] sm:$0xff] }
 0x166   :  { %1385 = vmatprep.subr.bf16.mxu0 %v1957_v1  ;;  %v1401_v43 = vpack.c.bf16 %v471_v42, %v470_v41  ;;  %v473_v45 = vld [vmem:[#allocation11 + $0x78] sm:$0xff]  ;;  %v552_v47 = vld [vmem:[#allocation14] sm:$0xff]  ;;  %v553_v48 = vld [vmem:[#allocation14 + $0x8] sm:$0xff] }
 0x167   :  { %v1404_v46 = vpack.c.bf16 %v473_v45, %v472_v44  ;;  %v554_v49 = vld [vmem:[#allocation14 + $0x10] sm:$0xff]  ;;  %v1407_v50 = vpack.c.bf16 %v553_v48, %v552_v47  ;;  %v555_v51 = vld [vmem:[#allocation14 + $0x18] sm:$0xff]  ;;  %v556_v53 = vld [vmem:[#allocation14 + $0x20] sm:$0xff] }
 0x168   :  { %1372 = vmatpush3.bf16.msra.mxu1 %v1371_v12  ;;  %v1410_v52 = vpack.c.bf16 %v555_v51, %v554_v49  ;;  %v557_v54 = vld [vmem:[#allocation14 + $0x28] sm:$0xff]  ;;  %v1099_v59 = vld [vmem:[#allocation10] ss:$0 sm:$0xff]  ;;  %v558_v2 = vld [vmem:[#allocation14 + $0x30] sm:$0xff] }
 0x169   :  { %1373 = vmatprep.subr.bf16.mxu1 %v1957_v1  ;;  %1387 = vmatpush3.bf16.msra.mxu0 %v1386_v28  ;;  %v1413_v55 = vpack.c.bf16 %v557_v54, %v556_v53  ;;  %v559_v4 = vld [vmem:[#allocation14 + $0x38] sm:$0xff]  ;;  %v642_v6 = vld [vmem:[#allocation17] sm:$0xff]  ;;  %v643_v7 = vld [vmem:[#allocation17 + $0x8] sm:$0xff] }
 0x16a   :  { %1388 = vmatprep.subr.bf16.mxu0 %v1957_v1  ;;  %v1416_v5 = vpack.c.bf16 %v559_v4, %v558_v2  ;;  %v644_v8 = vld [vmem:[#allocation17 + $0x10] sm:$0xff]  ;;  %v1419_v9 = vpack.c.bf16 %v643_v7, %v642_v6  ;;  %v645_v10 = vld [vmem:[#allocation17 + $0x18] sm:$0xff]  ;;  %v646_v12 = vld [vmem:[#allocation17 + $0x20] sm:$0xff] }
 0x16b   :  { %v1422_v11 = vpack.c.bf16 %v645_v10, %v644_v8  ;;  %v647_v13 = vld [vmem:[#allocation17 + $0x28] sm:$0xff]  ;;  %v648_v20 = vld [vmem:[#allocation17 + $0x30] sm:$0xff]  ;;  %v739_v23 = vld [vmem:[#allocation22] sm:$0xf] }
 0x16c   :  { %1375 = vmatpush3.bf16.msra.mxu1 %v1374_v15  ;;  %v1425_v14 = vpack.c.bf16 %v647_v13, %v646_v12  ;;  %v1100_v15 = vld [vmem:[#allocation13] ss:$0 sm:$0xff]  ;;  %v731_v24 = vld [vmem:[#allocation20] sm:$0xff]  ;;  %v732_v25 = vld [vmem:[#allocation20 + $0x8] sm:$0xff] }
 0x16d   :  { %1376 = vmatprep.subr.bf16.mxu1 %v1957_v1  ;;  %1390 = vmatpush3.bf16.msra.mxu0 %v1389_v31  ;;  %v1431_v26 = vpack.c.bf16 %v732_v25, %v731_v24  ;;  %v733_v27 = vld [vmem:[#allocation20 + $0x10] sm:$0xff]  ;;  %v734_v28 = vld [vmem:[#allocation20 + $0x18] sm:$0xff]  ;;  %v735_v30 = vld [vmem:[#allocation20 + $0x20] sm:$0xff] }
 0x16e   :  { %1391 = vmatprep.subr.bf16.mxu0 %v1957_v1  ;;  %v1434_v29 = vpack.c.bf16 %v734_v28, %v733_v27  ;;  %v736_v31 = vld [vmem:[#allocation20 + $0x28] sm:$0xff]  ;;  %v1101_v33 = vld [vmem:[#allocation16] ss:$0 sm:$0xff]  ;;  %v1103_v54 = vld [vmem:[#allocation19] ss:$0 sm:$0xff] }
 0x16f   :  { %v1437_v32 = vpack.c.bf16 %v736_v31, %v735_v30  ;;  %v738_v38 = vld [vmem:[#allocation20 + $0x38] sm:$0xff]  ;;  %v895_v41 = vld [vmem:[#allocation25] sm:$0xff]  ;;  %v896_v42 = vld [vmem:[#allocation25 + $0x8] sm:$0xff] }
 0x170   :  { %1378 = vmatpush3.bf16.msra.mxu1 %v1377_v18  ;;  %v1443_v45 = vpack.c.bf16 %v896_v42, %v895_v41  ;;  %v899_v48 = vld [vmem:[#allocation25 + $0x20] sm:$0xff]  ;;  %v900_v49 = vld [vmem:[#allocation25 + $0x28] sm:$0xff]  ;;  %v901_v51 = vld [vmem:[#allocation25 + $0x30] sm:$0xff] }
 0x171   :  { %1379 = vmatprep.subr.bf16.mxu1 %v1957_v1  ;;  %1393 = vmatpush3.bf16.msra.mxu0 %v1392_v34  ;;  %v907_v4 = vld [vmem:[#allocation25 + $0x60] sm:$0xff]  ;;  %v909_v7 = vld [vmem:[#allocation25 + $0x70] sm:$0xff]  ;;  %v910_v8 = vld [vmem:[#allocation25 + $0x78] sm:$0xff] }
 0x172   :  { %1394 = vmatprep.subr.bf16.mxu0 %v1957_v1  ;;  %v989_v10 = vld [vmem:[#allocation28 + $0x8] sm:$0xff]  ;;  %v1108_v13 = vld [vmem:[#allocation23] ss:$0 sm:$0xff] }
 0x174   :  { %1381 = vmatpush3.bf16.msra.mxu1 %v1380_v21  ;;  %v649_v21 = vld [vmem:[#allocation17 + $0x38] sm:$0xff] }
 0x175   :  { %1406 = vmatprep.subr.bf16.mxu1 %v1957_v1  ;;  %1396 = vmatpush3.bf16.msra.mxu0 %v1395_v37  ;;  %v737_v37 = vld [vmem:[#allocation20 + $0x30] sm:$0xff] }
 0x176   :  { %1397 = vmatprep.subr.bf16.mxu0 %v1957_v1  ;;  %v1440_v39 = vpack.c.bf16 %v738_v38, %v737_v37 }
 0x177   :  { %1223 = vmatmul.mubr.msk.f32.vlgmr.msra.gmra.mrb[2].mxu1 %vm375_vm3, %v282_v22  ;;  %v1428_v22 = vpack.c.bf16 %v649_v21, %v648_v20 }
 0x178   :  { %1276 = vmatprep.mubr.msk.f32.mxu1 %vm1956_vm0, %v1955_v0  ;;  %1408 = vmatpush3.bf16.msra.mxu1 %v1407_v50  ;;  %v1449_v50 = vpack.c.bf16 %v900_v49, %v899_v48 }
 0x179   :  { %1399 = vmatpush3.bf16.msra.mxu0 %v1398_v40  ;;  %1409 = vmatprep.subr.bf16.mxu1 %v1957_v1 }
 0x17a   :  { %1400 = vmatprep.subr.bf16.mxu0 %v1957_v1 }
 0x17c   :  { %1411 = vmatpush3.bf16.msra.mxu1 %v1410_v52  ;;  %v902_v52 = vld [vmem:[#allocation25 + $0x38] sm:$0xff] }
 0x17d   :  { %1402 = vmatpush3.bf16.msra.mxu0 %v1401_v43  ;;  %1412 = vmatprep.subr.bf16.mxu1 %v1957_v1  ;;  %v897_v43 = vld [vmem:[#allocation25 + $0x10] sm:$0xff]  ;;  %v1452_v53 = vpack.c.bf16 %v902_v52, %v901_v51 }
 0x17e   :  { %1403 = vmatprep.subr.bf16.mxu0 %v1957_v1 }
 0x180   :  { %1414 = vmatpush3.bf16.msra.mxu1 %v1413_v55 }
 0x181   :  { %1405 = vmatpush3.bf16.msra.mxu0 %v1404_v46  ;;  %1415 = vmatprep.subr.bf16.mxu1 %v1957_v1  ;;  %v898_v46 = vld [vmem:[#allocation25 + $0x18] sm:$0xff] }
 0x182   :  { %1418 = vmatprep.subr.bf16.mxu0 %v1957_v1  ;;  %v1446_v47 = vpack.c.bf16 %v898_v46, %v897_v43 }
 0x184   :  { %1417 = vmatpush3.bf16.msra.mxu1 %v1416_v5  ;;  %v908_v5 = vld [vmem:[#allocation25 + $0x68] sm:$0xff] }
 0x185   :  { %1298 = vmatprep.subr.mxu1 %v1955_v0  ;;  %v1461_v6 = vpack.c.bf16 %v908_v5, %v907_v4 }
 0x232   :  { %v371_v56 = vpop.f32.mrb[0].mxu1 }
 0x233   :  { %v1197_v57 = vpop.f32.mrb[1].mxu1 }
 0x24a   :  { %v445_v58 = vpop.f32.mrb[2].mxu1 }
 0x24b   :  { %v446_v60 = vadd.f32 %v445_v58, %v371_v56  ;;  %v1224_v61 = vpop.f32.mrb[3].mxu1 }
 0x24d   :  { %v456_v62 = vadd.f32 %v1099_v59, %v446_v60  ;;  %v903_v59 = vld [vmem:[#allocation25 + $0x40] sm:$0xff]  ;;  %v904_v60 = vld [vmem:[#allocation25 + $0x48] sm:$0xff] }
 0x24e   :  { %v1455_v61 = vpack.c.bf16 %v904_v60, %v903_v59 }
 0x24f   :  { %v457_v63 = vmax.f32 %v456_v62, 0.0  ;;  %v905_v62 = vld [vmem:[#allocation25 + $0x50] sm:$0xff] }
 0x251   :  { %1258 = vmatmul.mubr.f32.vlgmr.msra.gmra.mrb[0].mxu0 %v457_v63  ;;  %v906_v63 = vld [vmem:[#allocation25 + $0x58] sm:$0xff] }
 0x252   :  { %1295 = vmatprep.mubr.msk.f32.mxu0 %vm1956_vm0, %v1955_v0  ;;  %1420 = vmatpush3.bf16.msra.mxu0 %v1419_v9  ;;  %v1458_v2 = vpack.c.bf16 %v906_v63, %v905_v62  ;;  %v1464_v9 = vpack.c.bf16 %v910_v8, %v909_v7 }
 0x253   :  { %1421 = vmatprep.subr.bf16.mxu0 %v1957_v1 }
 0x256   :  { %1423 = vmatpush3.bf16.msra.mxu0 %v1422_v11 }
 0x257   :  { %1424 = vmatprep.subr.bf16.mxu0 %v1957_v1 }
 0x25a   :  { %1426 = vmatpush3.bf16.msra.mxu0 %v1425_v14 }
 0x25b   :  { %1427 = vmatprep.subr.bf16.mxu0 %v1957_v1 }
 0x25e   :  { %1429 = vmatpush3.bf16.msra.mxu0 %v1428_v22 }
 0x25f   :  { %1442 = vmatprep.subr.bf16.mxu0 %v1957_v1 }
 0x324   :  { %v547_v16 = vpop.f32.mrb[0].mxu0 }
 0x325   :  { %v548_v17 = vadd.f32 %v1100_v15, %v547_v16  ;;  %v1259_v18 = vpop.f32.mrb[1].mxu0 }
 0x326   :  { %v1109_v18 = vld [vmem:[#allocation26] ss:$0 sm:$0xff] }
 0x327   :  { %v551_v19 = vmax.f32 %v548_v17, 0.0 }
 0x329   :  { %1277 = vmatmul.mubr.msk.f32.vlgmr.msra.gmra.mrb[4].mxu1 %vm567_vm4, %v551_v19 }
 0x32a   :  { %1300 = vmatprep.mubr.msk.f32.mxu1 %vm1956_vm0, %v1955_v0  ;;  %1299 = vmatpush3.msk.msra.mxu1 %vm301_vm1, %v739_v23 }
 0x32b   :  { %1430 = vmatprep.subr.bf16.mxu1 %v1957_v1 }
 0x32d   :  { %1301 = vmatmul.mubr.msk.f32.vlgmr.msra.gmra.mrb[6].mxu1 %vm297_vm2, %v2325_v3 }
 0x32e   :  { %1432 = vmatpush3.bf16.msra.mxu1 %v1431_v26  ;;  %1319 = vmatprep.mubr.msk.f32.mxu1 %vm1956_vm0, %v1955_v0 }
 0x32f   :  { %1433 = vmatprep.subr.bf16.mxu1 %v1957_v1 }
 0x332   :  { %1435 = vmatpush3.bf16.msra.mxu1 %v1434_v29 }
 0x333   :  { %1436 = vmatprep.subr.bf16.mxu1 %v1957_v1 }
 0x336   :  { %1438 = vmatpush3.bf16.msra.mxu1 %v1437_v32 }
 0x337   :  { %1439 = vmatprep.subr.bf16.mxu1 %v1957_v1 }
 0x33a   :  { %1441 = vmatpush3.bf16.msra.mxu1 %v1440_v39 }
 0x33b   :  { %1466 = vmatprep.subr.bf16.mxu1 %v1957_v1 }
 0x3fc   :  { %v637_v3 = vpop.f32.mrb[4].mxu1 }
 0x3fd   :  { %v638_v34 = vadd.f32 %v1101_v33, %v637_v3  ;;  %v1278_v35 = vpop.f32.mrb[5].mxu1 }
 0x3ff   :  { %v641_v36 = vmax.f32 %v638_v34, 0.0 }
 0x400   :  { %v809_v40 = vpop.f32.mrb[6].mxu1 }
 0x401   :  { %1296 = vmatmul.mubr.msk.f32.vlgmr.msra.gmra.mrb[2].mxu0 %vm567_vm4, %v641_v36  ;;  %v1302_v44 = vpop.f32.mrb[7].mxu1 }
 0x402   :  { %1354 = vmatprep.mubr.msk.f32.mxu0 %vm1956_vm0, %v1955_v0  ;;  %1444 = vmatpush3.bf16.msra.mxu0 %v1443_v45 }
 0x403   :  { %1445 = vmatprep.subr.bf16.mxu0 %v1957_v1 }
 0x406   :  { %1447 = vmatpush3.bf16.msra.mxu0 %v1446_v47 }
 0x407   :  { %1448 = vmatprep.subr.bf16.mxu0 %v1957_v1 }
 0x40a   :  { %1450 = vmatpush3.bf16.msra.mxu0 %v1449_v50 }
 0x40b   :  { %1451 = vmatprep.subr.bf16.mxu0 %v1957_v1 }
 0x40e   :  { %1453 = vmatpush3.bf16.msra.mxu0 %v1452_v53 }
 0x40f   :  { %1454 = vmatprep.subr.bf16.mxu0 %v1957_v1 }
 0x412   :  { %1456 = vmatpush3.bf16.msra.mxu0 %v1455_v61 }
 0x413   :  { %1457 = vmatprep.subr.bf16.mxu0 %v1957_v1 }
 0x416   :  { %1459 = vmatpush3.bf16.msra.mxu0 %v1458_v2 }
 0x417   :  { %1460 = vmatprep.subr.bf16.mxu0 %v1957_v1 }
 0x41a   :  { %1462 = vmatpush3.bf16.msra.mxu0 %v1461_v6 }
 0x41b   :  { %1463 = vmatprep.subr.bf16.mxu0 %v1957_v1  ;;  %v1110_v1 = vld [vmem:[#allocation29] ss:$0 sm:$0xff] }
 0x41e   :  { %1465 = vmatpush3.bf16.msra.mxu0 %v1464_v9 }
 0x4d4   :  { %v726_v55 = vpop.f32.mrb[2].mxu0 }
 0x4d5   :  { %v727_v56 = vadd.f32 %v1103_v54, %v726_v55  ;;  %v1297_v57 = vpop.f32.mrb[3].mxu0 }
 0x4d7   :  { %v730_v58 = vmax.f32 %v727_v56, 0.0 }
 0x4d9   :  { %1320 = vmatmul.mubr.msk.f32.vlgmr.msra.gmra.mrb[8].mxu1 %vm567_vm4, %v730_v58 }
 0x4da   :  { %1361 = vmatprep.mubr.msk.f32.mxu1 %vm1956_vm0, %v1955_v0  ;;  %v988_v0 = vld [vmem:[#allocation28] sm:$0xff] }
 0x4db   :  { %v1467_v11 = vpack.c.bf16 %v989_v10, %v988_v0 }
 0x4dd   :  { %1468 = vmatpush3.bf16.msra.mxu1 %v1467_v11 }
 0x5ac   :  { %v882_v12 = vpop.f32.mrb[8].mxu1 }
 0x5ad   :  { %v883_v14 = vadd.f32 %v882_v12, %v809_v40  ;;  %v1321_v15 = vpop.f32.mrb[9].mxu1 }
 0x5af   :  { %v893_v16 = vadd.f32 %v1108_v13, %v883_v14 }
 0x5b1   :  { %1493 = vtanh.f32 %v893_v16 }
 0x5bb   :  { %v1494_v17 = vpop.eup %1493 }
 0x5bc   :  { %1355 = vmatmul.mubr.f32.vlgmr.msra.gmra.mrb[4].mxu0 %v1494_v17 }
 0x68f   :  { %v984_v19 = vpop.f32.mrb[4].mxu0 }
 0x690   :  { %v985_v20 = vadd.f32 %v1109_v18, %v984_v19  ;;  %v1356_v21 = vpop.f32.mrb[5].mxu0 }
 0x692   :  { %1362 = vmatmul.mubr.msk.f32.vlgmr.msra.gmra.mrb[10].mxu1 %vm997_vm5, %v985_v20 }
 0x765   :  { %v1067_v22 = vpop.f32.mrb[10].mxu1 }
 0x766   :  { %v1068_v23 = vadd.f32 %v1110_v1, %v1067_v22  ;;  %v1363_v24 = vpop.f32.mrb[11].mxu1 }
 0x768   :  { %1071 = vst [vmem:[#allocation31] sm:$0xff] %v1068_v23 }
 0x769   :  { %1902 = shalt.err (!%p1899_p8)
}
 0x76a   :  { %s1903_s26 = scalar_lea.hbm %s2415_s18, 128 }
 0x76b   :  { %p1904_p9 = scmp.ne.s32.totalorder %s2415_s18, %s1903_s26  ;;  %p1907_p10 = scmp.lt.u32.totalorder %s1903_s26, %s2415_s18 }
 0x76d   :  { %p1909_p11 = pnand %p1907_p10, %p1904_p9 }
 0x76f   :  { %1912 = shalt.err (!%p1909_p11)
}
 0x770   :  { %1081 = dma.vmem_to_hbm [thread:$0]  %s1079_s2, 128, %s2415_s18, [#allocation4]  }
 0x771   :  { %1933 = dma.done.wait [#allocation4], 128  }
 0x772   :  { %1934 = vsyncadd [#allocation4], 4294967168 }
 0x773   :  { %1085 = vsyncpa [#allocation3], 1 }
 0x774   :  { %1086 = vsyncpa [#allocation6], 1 }
 0x775   :  { %1087 = vsyncpa [#allocation9], 1 }
 0x776   :  { %1088 = vsyncpa [#allocation12], 1 }
 0x777   :  { %1089 = vsyncpa [#allocation15], 1 }
 0x778   :  { %1090 = vsyncpa [#allocation18], 1 }
 0x779   :  { %1091 = vsyncpa [#allocation21], 1 }
 0x77a   :  { %1092 = vsyncpa [#allocation24], 1 }
 0x77b   :  { %1093 = vsyncpa [#allocation27], 1 }
 0x77c   :  { %1094 = vsyncpa [#allocation30], 1 }
 0x77d   :  { %1095 = vsyncpa [#allocation4], 1 }

</bundles_post_ra>
